<compile_context>
chip_gen: v5e
topology: v5e:2x2
jax: 0.10.0
libtpu: 0.0.40
codegen_flags: <defaults>
</compile_context>

<pallas_src>
import jax
import jax.numpy as jnp
from jax.experimental import pallas as pl
from jax.experimental.pallas import tpu as pltpu

BN_EPS = 1e-5


def _round_up(x, m):
    return ((x + m - 1) // m) * m


def _mlp_kernel(x_ref,
                w1_ref, b1_ref,
                w2_ref, b2_ref,
                w3_ref, b3_ref,
                w4_ref, b4_ref,
                out_ref):
    # BN folded into W/b at trace time; Dropout is identity in eval mode.
    # Matmuls run in the weights' dtype (bf16 by default -> bf16 MXU path),
    # accumulation + bias add + ReLU stay on f32 (v5e VPU/EUP have no bf16).
    h = jnp.dot(x_ref[...], w1_ref[...], preferred_element_type=jnp.float32) + b1_ref[...]
    h = jnp.maximum(h, 0.0)
    h = jnp.dot(h.astype(w2_ref.dtype), w2_ref[...],
                preferred_element_type=jnp.float32) + b2_ref[...]
    h = jnp.maximum(h, 0.0)
    h = jnp.dot(h.astype(w3_ref.dtype), w3_ref[...],
                preferred_element_type=jnp.float32) + b3_ref[...]
    h = jnp.maximum(h, 0.0)
    out = jnp.dot(h.astype(w4_ref.dtype), w4_ref[...],
                  preferred_element_type=jnp.float32) + b4_ref[...]
    out_ref[...] = out.astype(out_ref.dtype)


def _fold_bn(w, b, gamma, beta, mean, var):
    """Fold eval-mode BatchNorm1d into the preceding Linear (trace time, f32)."""
    s = gamma * jax.lax.rsqrt(var + BN_EPS)          # (1, C)
    return w * s, (b - mean) * s + beta


def _pick_batch_tile(B):
    """Rows per grid step (multiple of 16 for bf16 sublane packing).

    Small B -> one step (per-step overhead dominates).
    Large B -> an EVEN number of steps so v7x's two TensorCores split the
    'parallel' batch axis evenly, with tb capped around ~2K rows so tiles fit
    comfortably inside the 16/32 MiB scoped-VMEM limits on every generation.
    """
    if B <= 512:
        return _round_up(B, 16)
    n_steps = 2 * pl.cdiv(B, 4096)                   # even step count, tb <= ~2048
    return _round_up(pl.cdiv(B, n_steps), 16)


def classifier_forward(x, params, compute_dtype=jnp.bfloat16):
    """x: (B, D). params: flat list of f32 arrays (see init_params).

    Returns (B, num_classes) float32 logits (eval-mode forward).
    """
    (w1, b1, g1, be1, m1, v1,
     w2, b2, g2, be2, m2, v2,
     w3, b3, g3, be3, m3, v3,
     w4, b4) = params

    B, D = x.shape
    num_classes = w4.shape[-1]

    # --- trace-time BN folding (f32), then cast matmul operands ------------
    fw1, fb1 = _fold_bn(w1, b1, g1, be1, m1, v1)
    fw2, fb2 = _fold_bn(w2, b2, g2, be2, m2, v2)
    fw3, fb3 = _fold_bn(w3, b3, g3, be3, m3, v3)

    # Weights + x in compute_dtype (bf16 by default); biases stay f32 so the
    # in-kernel bias add / ReLU run on the f32 accumulator.
    x = x.astype(compute_dtype)
    fw1, fw2, fw3, fw4 = (w.astype(compute_dtype) for w in (fw1, fw2, fw3, w4))
    fb4 = b4.astype(jnp.float32)

    weights = [fw1, fb1, fw2, fb2, fw3, fb3, fw4, fb4]

    # --- batch tiling: no padding, partial last block handled by Pallas ----
    tb = _pick_batch_tile(B)
    grid = (pl.cdiv(B, tb),)

    in_specs = [pl.BlockSpec((tb, D), lambda i: (i, 0))]
    in_specs += [pl.BlockSpec(w.shape, lambda i: (0, 0)) for w in weights]

    flops = 2 * B * (D * 128 + 128 * 64 + 64 * 32 + 32 * num_classes)
    bytes_accessed = (x.size * x.dtype.itemsize
                      + sum(w.size * w.dtype.itemsize for w in weights)
                      + B * num_classes * 4)

    out = pl.pallas_call(
        _mlp_kernel,
        out_shape=jax.ShapeDtypeStruct((B, num_classes), jnp.float32),
        grid=grid,
        in_specs=in_specs,
        out_specs=pl.BlockSpec((tb, num_classes), lambda i: (i, 0)),
        compiler_params=pltpu.CompilerParams(
            dimension_semantics=("parallel",),
            vmem_limit_bytes=32 * 1024 * 1024),
        cost_estimate=pl.CostEstimate(
            flops=flops, transcendentals=0, bytes_accessed=bytes_accessed),
    )(x, *weights)

    return out


def init_params(key, input_dim, num_classes):
    """Deterministic synthetic parameters matching nn.Linear / nn.BatchNorm1d.

    Linear weights are stored pre-transposed as (in, out) so the kernel does
    x @ W; vectors (bias / gamma / beta / running stats) are stored as (1, C).
    """
    dims = [input_dim, 128, 64, 32, num_classes]
    params = []
    keys = jax.random.split(key, 8)
    ki = 0
    for li in range(4):
        fan_in, fan_out = dims[li], dims[li + 1]
        bound = 1.0 / jnp.sqrt(fan_in)
        w = jax.random.uniform(keys[ki], (fan_in, fan_out), jnp.float32, -bound, bound)
        ki += 1
        b = jax.random.uniform(keys[ki], (1, fan_out), jnp.float32, -bound, bound)
        ki += 1
        params += [w, b]
        if li < 3:
            gamma = jnp.ones((1, fan_out), jnp.float32)
            beta = jnp.zeros((1, fan_out), jnp.float32)
            run_mean = 0.01 * jnp.arange(fan_out, dtype=jnp.float32).reshape(1, fan_out)
            run_var = jnp.ones((1, fan_out), jnp.float32) + 0.05 * jnp.arange(
                fan_out, dtype=jnp.float32).reshape(1, fan_out) / fan_out
            params += [gamma, beta, run_mean, run_var]
    return params


def reference_forward(x, params):
    """Pure-JAX f32 reference (unfolded BN, eval mode) for correctness check."""
    (w1, b1, g1, be1, m1, v1,
     w2, b2, g2, be2, m2, v2,
     w3, b3, g3, be3, m3, v3,
     w4, b4) = params

    def block(h, w, b, g, be, m, v):
        y = h @ w + b
        y = (y - m) / jnp.sqrt(v + BN_EPS) * g + be
        return jnp.maximum(y, 0.0)

    h = block(x, w1, b1, g1, be1, m1, v1)
    h = block(h, w2, b2, g2, be2, m2, v2)
    h = block(h, w3, b3, g3, be3, m3, v3)
    return h @ w4 + b4


if __name__ == "__main__":
    key = jax.random.PRNGKey(0)
    k_x, k_x2, k_p = jax.random.split(key, 3)

    input_dim = 34      # e.g. 17 pose keypoints * (x, y)
    num_classes = 5
    params = init_params(k_p, input_dim, num_classes)

    # Small batch, f32 compute path (single grid step, exact vs reference).
    batch = 16
    x = jax.random.normal(k_x, (batch, input_dim), jnp.float32)
    out = jax.block_until_ready(
        classifier_forward(x, params, compute_dtype=jnp.float32))
    ref = reference_forward(x, params)
    assert out.shape == (batch, num_classes)
    assert jnp.allclose(out, ref, atol=1e-4, rtol=1e-4), "mismatch (f32, B=16)"

    # Larger, non-aligned batch: 2 grid steps, partial last block (no padding),
    # default bf16 matmul path -> looser tolerance per review.
    batch2 = 1040
    x2 = jax.random.normal(k_x2, (batch2, input_dim), jnp.float32)
    out2 = jax.block_until_ready(classifier_forward(x2, params))
    ref2 = reference_forward(x2, params)
    assert out2.shape == (batch2, num_classes)
    assert jnp.allclose(out2, ref2, atol=5e-2, rtol=5e-2), "mismatch (bf16, B=1040)"

    print("KERNEL_OK")
</pallas_src>

<mosaic_0001>
module attributes {stable_mosaic.version = 11 : i64} {
  func.func @_mlp_kernel(%arg0: i32, %arg1: memref<16x34xf32, #tpu.memory_space<vmem>>, %arg2: memref<34x128xf32, #tpu.memory_space<vmem>>, %arg3: memref<1x128xf32, #tpu.memory_space<vmem>>, %arg4: memref<128x64xf32, #tpu.memory_space<vmem>>, %arg5: memref<1x64xf32, #tpu.memory_space<vmem>>, %arg6: memref<64x32xf32, #tpu.memory_space<vmem>>, %arg7: memref<1x32xf32, #tpu.memory_space<vmem>>, %arg8: memref<32x5xf32, #tpu.memory_space<vmem>>, %arg9: memref<1x5xf32, #tpu.memory_space<vmem>>, %arg10: memref<16x5xf32, #tpu.memory_space<vmem>>) attributes {dimension_semantics = [#tpu.dimension_semantics<parallel>], iteration_bounds = array<i64: 1>, scalar_prefetch = 0 : i64, scratch_operands = 0 : i64, tpu.core_type = #tpu.core_type<tc>, window_params = [{transform_indices = @transform_0, window_bounds = array<i64: 16, 34>}, {pipeline_mode = #tpu.pipeline_mode<synchronous>, transform_indices = @transform_1, window_bounds = array<i64: 34, 128>}, {pipeline_mode = #tpu.pipeline_mode<synchronous>, transform_indices = @transform_2, window_bounds = array<i64: 1, 128>}, {pipeline_mode = #tpu.pipeline_mode<synchronous>, transform_indices = @transform_3, window_bounds = array<i64: 128, 64>}, {pipeline_mode = #tpu.pipeline_mode<synchronous>, transform_indices = @transform_4, window_bounds = array<i64: 1, 64>}, {pipeline_mode = #tpu.pipeline_mode<synchronous>, transform_indices = @transform_5, window_bounds = array<i64: 64, 32>}, {pipeline_mode = #tpu.pipeline_mode<synchronous>, transform_indices = @transform_6, window_bounds = array<i64: 1, 32>}, {pipeline_mode = #tpu.pipeline_mode<synchronous>, transform_indices = @transform_7, window_bounds = array<i64: 32, 5>}, {pipeline_mode = #tpu.pipeline_mode<synchronous>, transform_indices = @transform_8, window_bounds = array<i64: 1, 5>}, {transform_indices = @transform_9, window_bounds = array<i64: 16, 5>}]} {
    %c0 = arith.constant 0 : index
    %c0_0 = arith.constant 0 : index
    %0 = vector.load %arg1[%c0, %c0_0] : memref<16x34xf32, #tpu.memory_space<vmem>>, vector<16x34xf32>
    %c0_1 = arith.constant 0 : index
    %c0_2 = arith.constant 0 : index
    %1 = vector.load %arg2[%c0_1, %c0_2] : memref<34x128xf32, #tpu.memory_space<vmem>>, vector<34x128xf32>
    %cst = arith.constant dense<0.000000e+00> : vector<16x128xf32>
    %2 = tpu.matmul %0, %1, %cst {dimension_numbers = #tpu.dot_dimension_numbers<[1], [0], [0], [1], [0, 0, 1, 1], [], []>} : vector<16x34xf32>, vector<34x128xf32>, vector<16x128xf32> -> vector<16x128xf32>
    %c0_3 = arith.constant 0 : index
    %c0_4 = arith.constant 0 : index
    %3 = vector.load %arg3[%c0_3, %c0_4] : memref<1x128xf32, #tpu.memory_space<vmem>>, vector<1x128xf32>
    %4 = vector.broadcast %3 : vector<1x128xf32> to vector<16x128xf32>
    %5 = arith.addf %2, %4 : vector<16x128xf32>
    %cst_5 = arith.constant 0.000000e+00 : f32
    %6 = vector.broadcast %cst_5 : f32 to vector<16x128xf32>
    %7 = arith.maximumf %5, %6 : vector<16x128xf32>
    %c0_6 = arith.constant 0 : index
    %c0_7 = arith.constant 0 : index
    %8 = vector.load %arg4[%c0_6, %c0_7] : memref<128x64xf32, #tpu.memory_space<vmem>>, vector<128x64xf32>
    %cst_8 = arith.constant dense<0.000000e+00> : vector<16x64xf32>
    %9 = tpu.matmul %7, %8, %cst_8 {dimension_numbers = #tpu.dot_dimension_numbers<[1], [0], [0], [1], [0, 0, 1, 1], [], []>} : vector<16x128xf32>, vector<128x64xf32>, vector<16x64xf32> -> vector<16x64xf32>
    %c0_9 = arith.constant 0 : index
    %c0_10 = arith.constant 0 : index
    %10 = vector.load %arg5[%c0_9, %c0_10] : memref<1x64xf32, #tpu.memory_space<vmem>>, vector<1x64xf32>
    %11 = vector.broadcast %10 : vector<1x64xf32> to vector<16x64xf32>
    %12 = arith.addf %9, %11 : vector<16x64xf32>
    %cst_11 = arith.constant 0.000000e+00 : f32
    %13 = vector.broadcast %cst_11 : f32 to vector<16x64xf32>
    %14 = arith.maximumf %12, %13 : vector<16x64xf32>
    %c0_12 = arith.constant 0 : index
    %c0_13 = arith.constant 0 : index
    %15 = vector.load %arg6[%c0_12, %c0_13] : memref<64x32xf32, #tpu.memory_space<vmem>>, vector<64x32xf32>
    %cst_14 = arith.constant dense<0.000000e+00> : vector<16x32xf32>
    %16 = tpu.matmul %14, %15, %cst_14 {dimension_numbers = #tpu.dot_dimension_numbers<[1], [0], [0], [1], [0, 0, 1, 1], [], []>} : vector<16x64xf32>, vector<64x32xf32>, vector<16x32xf32> -> vector<16x32xf32>
    %c0_15 = arith.constant 0 : index
    %c0_16 = arith.constant 0 : index
    %17 = vector.load %arg7[%c0_15, %c0_16] : memref<1x32xf32, #tpu.memory_space<vmem>>, vector<1x32xf32>
    %18 = vector.broadcast %17 : vector<1x32xf32> to vector<16x32xf32>
    %19 = arith.addf %16, %18 : vector<16x32xf32>
    %cst_17 = arith.constant 0.000000e+00 : f32
    %20 = vector.broadcast %cst_17 : f32 to vector<16x32xf32>
    %21 = arith.maximumf %19, %20 : vector<16x32xf32>
    %c0_18 = arith.constant 0 : index
    %c0_19 = arith.constant 0 : index
    %22 = vector.load %arg8[%c0_18, %c0_19] : memref<32x5xf32, #tpu.memory_space<vmem>>, vector<32x5xf32>
    %cst_20 = arith.constant dense<0.000000e+00> : vector<16x5xf32>
    %23 = tpu.matmul %21, %22, %cst_20 {dimension_numbers = #tpu.dot_dimension_numbers<[1], [0], [0], [1], [0, 0, 1, 1], [], []>} : vector<16x32xf32>, vector<32x5xf32>, vector<16x5xf32> -> vector<16x5xf32>
    %c0_21 = arith.constant 0 : index
    %c0_22 = arith.constant 0 : index
    %24 = vector.load %arg9[%c0_21, %c0_22] : memref<1x5xf32, #tpu.memory_space<vmem>>, vector<1x5xf32>
    %25 = vector.broadcast %24 : vector<1x5xf32> to vector<16x5xf32>
    %26 = arith.addf %23, %25 : vector<16x5xf32>
    %c0_23 = arith.constant 0 : index
    %c0_24 = arith.constant 0 : index
    %27 = vector.load %arg10[%c0_23, %c0_24] : memref<16x5xf32, #tpu.memory_space<vmem>>, vector<16x5xf32>
    tpu.vector_store %arg10[%c0_23, %c0_24], %26 {strides = array<i32>} : memref<16x5xf32, #tpu.memory_space<vmem>>, vector<16x5xf32>,
    return
  }
  func.func @transform_0(%arg0: i32) -> (i32, i32) {
    %c0_i32 = arith.constant 0 : i32
    %c0_i32_0 = arith.constant 0 : i32
    return %arg0, %c0_i32 : i32, i32
  }
  func.func @transform_1(%arg0: i32) -> (i32, i32) {
    %c0_i32 = arith.constant 0 : i32
    %c0_i32_0 = arith.constant 0 : i32
    %c0_i32_1 = arith.constant 0 : i32
    return %c0_i32, %c0_i32_0 : i32, i32
  }
  func.func @transform_2(%arg0: i32) -> (i32, i32) {
    %c0_i32 = arith.constant 0 : i32
    %c0_i32_0 = arith.constant 0 : i32
    %c0_i32_1 = arith.constant 0 : i32
    return %c0_i32, %c0_i32_0 : i32, i32
  }
  func.func @transform_3(%arg0: i32) -> (i32, i32) {
    %c0_i32 = arith.constant 0 : i32
    %c0_i32_0 = arith.constant 0 : i32
    %c0_i32_1 = arith.constant 0 : i32
    return %c0_i32, %c0_i32_0 : i32, i32
  }
  func.func @transform_4(%arg0: i32) -> (i32, i32) {
    %c0_i32 = arith.constant 0 : i32
    %c0_i32_0 = arith.constant 0 : i32
    %c0_i32_1 = arith.constant 0 : i32
    return %c0_i32, %c0_i32_0 : i32, i32
  }
  func.func @transform_5(%arg0: i32) -> (i32, i32) {
    %c0_i32 = arith.constant 0 : i32
    %c0_i32_0 = arith.constant 0 : i32
    %c0_i32_1 = arith.constant 0 : i32
    return %c0_i32, %c0_i32_0 : i32, i32
  }
  func.func @transform_6(%arg0: i32) -> (i32, i32) {
    %c0_i32 = arith.constant 0 : i32
    %c0_i32_0 = arith.constant 0 : i32
    %c0_i32_1 = arith.constant 0 : i32
    return %c0_i32, %c0_i32_0 : i32, i32
  }
  func.func @transform_7(%arg0: i32) -> (i32, i32) {
    %c0_i32 = arith.constant 0 : i32
    %c0_i32_0 = arith.constant 0 : i32
    %c0_i32_1 = arith.constant 0 : i32
    return %c0_i32, %c0_i32_0 : i32, i32
  }
  func.func @transform_8(%arg0: i32) -> (i32, i32) {
    %c0_i32 = arith.constant 0 : i32
    %c0_i32_0 = arith.constant 0 : i32
    %c0_i32_1 = arith.constant 0 : i32
    return %c0_i32, %c0_i32_0 : i32, i32
  }
  func.func @transform_9(%arg0: i32) -> (i32, i32) {
    %c0_i32 = arith.constant 0 : i32
    %c0_i32_0 = arith.constant 0 : i32
    return %arg0, %c0_i32 : i32, i32
  }
}

</mosaic_0001>

<bundles_post_ra>
// kernel: tpu_custom_call.1
= control target key start
LH: loop header
LB: loop body
LE: loop exit
PB: predicated region body
PF: predicated region fallthrough
CT: control target
= control target key end

     0   :  { %vm50_vm0 = vcmask 1041408   ;;  %vm43_vm1 = vcmask 277504   ;;  %vm136_vm2 = vcmask 523264   ;;  %vm176_vm3 = vcmask 261120   ;;  %s397_s1 = inlined_call_operand.vmem [shape: f32[34,128], index: 1, kind: input, shape index: {}]   ;;  %s398_s3 = inlined_call_operand.vmem [shape: f32[128,64], index: 3, kind: input, shape index: {}]   ;;  %s399_s0 = inlined_call_operand.vmem [shape: f32[16,34], index: 0, kind: input, shape index: {}]   ;;  %s400_s2 = inlined_call_operand.vmem [shape: f32[1,128], index: 2, kind: input, shape index: {}]   ;;  %s401_s4 = inlined_call_operand.vmem [shape: f32[1,64], index: 4, kind: input, shape index: {}]   ;;  %s402_s5 = inlined_call_operand.vmem [shape: f32[64,32], index: 5, kind: input, shape index: {}]   ;;  %s403_s6 = inlined_call_operand.vmem [shape: f32[1,32], index: 6, kind: input, shape index: {}]   ;;  %s404_s7 = inlined_call_operand.vmem [shape: f32[32,5], index: 7, kind: input, shape index: {}]   ;;  %s405_s8 = inlined_call_operand.vmem [shape: f32[1,5], index: 8, kind: input, shape index: {}]   ;;  %s406_s9 = inlined_call_operand.vmem [shape: f32[16,5], index: 9, kind: output, shape index: {}]  }
   0x1   :  { %v38_v0 = vld [vmem:[%s397_s1 + $0x20] sm:$0x3]  ;;  %v37_v1 = vld [vmem:[%s397_s1 + $0x18] sm:$0xff]  ;;  %v36_v2 = vld [vmem:[%s397_s1 + $0x10] sm:$0xff]  ;;  %vm206_vm4 = vcmask 39936  }
   0x2   :  { %213 = vmatpush.msk.msra.mxu0 %vm50_vm0, %v38_v0  ;;  %v94_v3 = vld [vmem:[%s398_s3 + $0x78] sm:$0xff]  ;;  %v93_v4 = vld [vmem:[%s398_s3 + $0x70] sm:$0xff]  ;;  %v35_v5 = vld [vmem:[%s397_s1 + $0x8] sm:$0xff] }
   0x3   :  { %99 = vmatpush.msra.mxu1 %v94_v3  ;;  %v92_v6 = vld [vmem:[%s398_s3 + $0x68] sm:$0xff]  ;;  %v34_v7 = vld [vmem:[%s397_s1] sm:$0xff]  ;;  %v90_v10 = vld [vmem:[%s398_s3 + $0x58] sm:$0xff] }
   0x4   :  { %66 = vmatpush.msra.mxu0 %v37_v1  ;;  %v91_v8 = vld [vmem:[%s398_s3 + $0x60] sm:$0xff]  ;;  %v89_v11 = vld [vmem:[%s398_s3 + $0x50] sm:$0xff]  ;;  %v88_v12 = vld [vmem:[%s398_s3 + $0x48] sm:$0xff] }
   0x5   :  { %100 = vmatpush.msra.mxu1 %v93_v4  ;;  %v32_v9 = vld [vmem:[%s399_s0] sm:$0xff]  ;;  %v33_v14 = vld [vmem:[%s399_s0 + $0x8] sm:$0xff]  ;;  %v86_v15 = vld [vmem:[%s398_s3 + $0x38] sm:$0xff] }
   0x6   :  { %67 = vmatpush.msra.mxu0 %v36_v2  ;;  %v87_v13 = vld [vmem:[%s398_s3 + $0x40] sm:$0xff]  ;;  %v85_v16 = vld [vmem:[%s398_s3 + $0x30] sm:$0xff]  ;;  %v84_v17 = vld [vmem:[%s398_s3 + $0x28] sm:$0xff] }
   0x7   :  { %101 = vmatpush.msra.mxu1 %v92_v6  ;;  %v83_v18 = vld [vmem:[%s398_s3 + $0x20] sm:$0xff]  ;;  %v82_v19 = vld [vmem:[%s398_s3 + $0x18] sm:$0xff]  ;;  %v81_v20 = vld [vmem:[%s398_s3 + $0x10] sm:$0xff] }
   0x8   :  { %68 = vmatpush.msra.mxu0 %v35_v5  ;;  %v80_v21 = vld [vmem:[%s398_s3 + $0x8] sm:$0xff]  ;;  %v79_v22 = vld [vmem:[%s398_s3] sm:$0xff]  ;;  %v131_v23 = vld [vmem:[%s402_s5 + $0x38] sm:$0xff] }
   0x9   :  { %102 = vmatpush.msra.mxu1 %v91_v8  ;;  %v130_v24 = vld [vmem:[%s402_s5 + $0x30] sm:$0xff]  ;;  %151 = vmatpush.msra.mxu2 %v131_v23  ;;  %v129_v25 = vld [vmem:[%s402_s5 + $0x28] sm:$0xff]  ;;  %v128_v26 = vld [vmem:[%s402_s5 + $0x20] sm:$0xff] }
   0xa   :  { %69 = vmatpush.msra.mxu0 %v34_v7  ;;  %v127_v27 = vld [vmem:[%s402_s5 + $0x18] sm:$0xff]  ;;  %v220_v28 = vld [vmem:[%s400_s2] ss:$0 sm:$0xff]  ;;  %v126_v35 = vld [vmem:[%s402_s5 + $0x10] sm:$0xff] }
   0xb   :  { %214 = vmatmul.msk.f32.vlgmr.msra.gmra.mxu0 %vm43_vm1, %v32_v9  ;;  %103 = vmatpush.msra.mxu1 %v90_v10  ;;  %v125_v36 = vld [vmem:[%s402_s5 + $0x8] sm:$0xff]  ;;  %v124_v37 = vld [vmem:[%s402_s5] sm:$0xff]  ;;  %v171_v38 = vld [vmem:[%s404_s7 + $0x18] sm:$0xff] }
   0xc   :  { %152 = vmatpush.msra.mxu2 %v130_v24  ;;  %195 = vmatpush.msra.mxu3 %v171_v38  ;;  %v221_v39 = vld [vmem:[%s401_s4] ss:$0 sm:$0xff]  ;;  %v170_v46 = vld [vmem:[%s404_s7 + $0x10] sm:$0xff]  ;;  %v169_v47 = vld [vmem:[%s404_s7 + $0x8] sm:$0xff] }
   0xd   :  { %104 = vmatpush.msra.mxu1 %v89_v11  ;;  %v168_v48 = vld [vmem:[%s404_s7] sm:$0xff] }
   0xe   :  { %153 = vmatpush.msra.mxu2 %v129_v25  ;;  %196 = vmatpush.msra.mxu3 %v170_v46  ;;  %v222_v49 = vld [vmem:[%s403_s6] ss:$0 sm:$0xff] }
   0xf   :  { %105 = vmatpush.msra.mxu1 %v88_v12  ;;  %v223_v56 = vld [vmem:[%s405_s8] ss:$0 sm:$0xff] }
  0x10   :  { %154 = vmatpush.msra.mxu2 %v128_v26  ;;  %197 = vmatpush.msra.mxu3 %v169_v47 }
  0x11   :  { %106 = vmatpush.msra.mxu1 %v87_v13 }
  0x12   :  { %155 = vmatpush.msra.mxu2 %v127_v27  ;;  %198 = vmatpush.msra.mxu3 %v168_v48 }
  0x13   :  { %215 = vmatmul.msk.f32.gmra.mxu0 %vm43_vm1, %v33_v14  ;;  %107 = vmatpush.msra.mxu1 %v86_v15 }
  0x14   :  { %156 = vmatpush.msra.mxu2 %v126_v35 }
  0x15   :  { %108 = vmatpush.msra.mxu1 %v85_v16 }
  0x16   :  { %157 = vmatpush.msra.mxu2 %v125_v36 }
  0x17   :  { %109 = vmatpush.msra.mxu1 %v84_v17 }
  0x18   :  { %158 = vmatpush.msra.mxu2 %v124_v37 }
  0x19   :  { %110 = vmatpush.msra.mxu1 %v83_v18 }
  0x1b   :  { %111 = vmatpush.msra.mxu1 %v82_v19 }
  0x1d   :  { %112 = vmatpush.msra.mxu1 %v81_v20 }
  0x1f   :  { %113 = vmatpush.msra.mxu1 %v80_v21 }
  0x21   :  { %114 = vmatpush.msra.mxu1 %v79_v22 }
  0x88   :  { %v71_v29 = vpop.f32.mrf.mxu0 }
  0x89   :  { %v72_v30 = vadd.f32 %v220_v28, %v71_v29 }
  0x8b   :  { %v77_v31 = vmax.f32 %v72_v30, 0.0 }
  0x8d   :  { %115 = vmatmul.f32.vlgmr.msra.gmra.mxu1 %v77_v31 }
  0x90   :  { %v74_v32 = vpop.f32.mrf.mxu0 }
  0x91   :  { %v75_v33 = vadd.f32 %v220_v28, %v74_v32 }
  0x93   :  { %v78_v34 = vmax.f32 %v75_v33, 0.0 }
  0x95   :  { %118 = vmatmul.f32.gmra.mxu1 %v78_v34 }
 0x10a   :  { %v116_v40 = vpop.f32.mrf.mxu1 }
 0x10b   :  { %v117_v41 = vadd.f32 %v221_v39, %v116_v40 }
 0x10d   :  { %v122_v42 = vmax.f32 %v117_v41, 0.0 }
 0x10f   :  { %216 = vmatmul.msk.f32.vlgmr.msra.gmra.mxu2 %vm136_vm2, %v122_v42 }
 0x112   :  { %v119_v43 = vpop.f32.mrf.mxu1 }
 0x113   :  { %v120_v44 = vadd.f32 %v221_v39, %v119_v43 }
 0x115   :  { %v123_v45 = vmax.f32 %v120_v44, 0.0 }
 0x117   :  { %217 = vmatmul.msk.f32.gmra.mxu2 %vm136_vm2, %v123_v45 }
 0x192   :  { %v160_v50 = vpop.f32.mrf.mxu2 }
 0x193   :  { %v161_v51 = vadd.f32 %v222_v49, %v160_v50 }
 0x195   :  { %v166_v52 = vmax.f32 %v161_v51, 0.0 }
 0x197   :  { %218 = vmatmul.msk.f32.vlgmr.msra.gmra.mxu3 %vm176_vm3, %v166_v52 }
 0x19a   :  { %v163_v53 = vpop.f32.mrf.mxu2 }
 0x19b   :  { %v164_v54 = vadd.f32 %v222_v49, %v163_v53 }
 0x19d   :  { %v167_v55 = vmax.f32 %v164_v54, 0.0 }
 0x19f   :  { %219 = vmatmul.msk.f32.gmra.mxu3 %vm176_vm3, %v167_v55 }
 0x21a   :  { %v200_v57 = vpop.f32.mrf.mxu3 }
 0x21b   :  { %v201_v58 = vadd.f32 %v223_v56, %v200_v57 }
 0x21d   :  { %207 = vst.msk [vmem:[%s406_s9] sm:$0xff] %vm206_vm4, %v201_v58 }
 0x222   :  { %v203_v59 = vpop.f32.mrf.mxu3 }
 0x223   :  { %v204_v60 = vadd.f32 %v223_v56, %v203_v59 }
 0x225   :  { %208 = vst.msk [vmem:[%s406_s9 + $0x8] sm:$0xff] %vm206_vm4, %v204_v60 }

</bundles_post_ra>
